<compile_context>
chip_gen: v6e
topology: v6e:2x2x1
jax: 0.10.0
libtpu: 0.0.40
codegen_flags: <defaults>
</compile_context>

<pallas_src>
import functools

import jax
import jax.numpy as jnp
from jax.experimental import pallas as pl
from jax.experimental.pallas import tpu as pltpu

MARGIN = 2.0
EPS = 1e-6  # F.pairwise_distance default eps (added to the difference, per torch docs)


def _round_up(x, m):
    return (x + m - 1) // m * m


def _cdiv(a, b):
    return (a + b - 1) // b


def _contrastive_kernel(o1_ref, o2_ref, label_ref, out_ref, acc_ref, *,
                        feat_dim, tile_d, mask_d):
    k = pl.program_id(1)  # reduction (feature) axis, innermost / "arbitrary"

    @pl.when(k == 0)
    def _init():
        acc_ref[...] = jnp.zeros_like(acc_ref)

    # Upcast in VMEM (bf16 inputs halve HBM traffic; math stays f32).
    diff = o1_ref[...].astype(jnp.float32) - o2_ref[...].astype(jnp.float32) + EPS
    dd = diff * diff                                               # (TB, TD)
    if mask_d:
        # Ragged last feature tile: zero the contribution of lanes past the true D.
        col = jax.lax.broadcasted_iota(jnp.int32, dd.shape, dimension=1)
        dd = jnp.where(k * tile_d + col < feat_dim, dd, 0.0)
    # Per-row squared-L2 partial sum, stored lane-dense as a (1, TB) row.
    acc_ref[...] += jnp.sum(dd, axis=-1)[None, :]

    @pl.when(k == pl.num_programs(1) - 1)
    def _finalize():
        sq = acc_ref[...]                                          # (1, TB) == d^2 per example
        d = jnp.sqrt(sq)
        hinge = jnp.maximum(MARGIN - d, 0.0)                       # clamp(margin - d, min=0)
        lbl = label_ref[...].reshape(sq.shape).astype(jnp.float32)
        # Similar-pair term reuses sq directly (no sqrt-then-square round trip).
        loss = (1.0 - lbl) * sq + lbl * (hinge * hinge)
        out_ref[...] = loss.reshape(out_ref.shape)


def _vmem_limit_bytes():
    """Per-generation scoped-VMEM limit: ~75% of capacity, capped at 64 MiB (v7x per-TC)."""
    cap = 64 * 1024 * 1024
    try:
        info = pltpu.get_tpu_info()
        cap = int(getattr(info, "vmem_capacity_bytes", cap)) or cap
    except Exception:
        pass
    return max(16 * 1024 * 1024, min(cap * 3 // 4, 64 * 1024 * 1024))


def contrastive_loss(output1, output2, label, *, max_block_rows=4096, feature_block=None):
    """output1, output2: (B, D) float32/bfloat16; label: (B,) or (B, 1).

    `feature_block` optionally forces the D tile (multiple of 128); by default D is only
    tiled when a full-D block would not fit the per-step VMEM budget.
    """
    B, D = output1.shape
    label = jnp.ravel(label).astype(jnp.float32)

    itemsize = jnp.dtype(output1.dtype).itemsize
    vmem_limit = _vmem_limit_bytes()

    # Per-step footprint model:
    #   inputs       : 2 arrays x 2 pipeline buffers x TB*TD*itemsize
    #   f32 temps    : ~4 full tiles (casts, diff, diff^2) x TB*TD*4
    # Keep that at <= half the scoped limit; the rest is headroom for the tiny lane-dense
    # label/output buffers, the accumulator and Mosaic-internal scratch.
    tile_budget = vmem_limit // 2
    bytes_per_elem = 4 * itemsize + 16
    max_tile_elems = max(8 * 128, tile_budget // bytes_per_elem)

    # Feature (reduction) tiling: keep full D when it fits even at TB=8 rows, otherwise
    # tile D in multiples of 128 and mask the ragged tail inside the kernel.
    if feature_block is not None:
        TD = int(feature_block)
    elif 8 * D <= max_tile_elems:
        TD = D
    else:
        TD = max(128, (max_tile_elems // 8) // 128 * 128)
    if TD >= D:
        TD = D
    elif TD % 128 != 0:
        raise ValueError("feature tile must be a multiple of 128 when it does not cover D")
    num_d_tiles = _cdiv(D, TD)
    mask_d = (D % TD) != 0

    # Batch tiling: large enough to amortize the ~0.35 us per-step overhead, small enough to
    # (a) fit the VMEM budget and (b) leave >= ~4 grid steps when B allows it so the DMA
    # pipeline (and v7x's two TensorCores) has work to overlap.
    rows_by_budget = max(8, (max_tile_elems // TD) // 8 * 8)
    rows_by_steps = _round_up(_cdiv(B, 4), 8)
    TB = max(8, min(rows_by_budget, rows_by_steps, int(max_block_rows), _round_up(B, 8)))
    num_b_tiles = _cdiv(B, TB)
    B_lanes = num_b_tiles * TB

    # Only the tiny label is padded/reshaped to the lane-dense (num_b_tiles, 1, TB) layout.
    # The big (B, D) inputs are streamed as-is: ragged edge blocks are handled by Pallas and
    # the resulting garbage rows land at indices >= B, which are sliced off before the mean.
    label_pad = jnp.pad(label, (0, B_lanes - B)) if B_lanes != B else label
    label_lanes = label_pad.reshape(num_b_tiles, 1, TB)

    kernel = functools.partial(_contrastive_kernel, feat_dim=D, tile_d=TD, mask_d=mask_d)

    per_tile = pl.pallas_call(
        kernel,
        out_shape=jax.ShapeDtypeStruct((num_b_tiles, 1, TB), jnp.float32),
        grid=(num_b_tiles, num_d_tiles),
        in_specs=[
            pl.BlockSpec((TB, TD), lambda i, k: (i, k)),
            pl.BlockSpec((TB, TD), lambda i, k: (i, k)),
            pl.BlockSpec((1, 1, TB), lambda i, k: (i, 0, 0)),   # lane-dense label row per tile
        ],
        out_specs=pl.BlockSpec((1, 1, TB), lambda i, k: (i, 0, 0)),
        scratch_shapes=[pltpu.VMEM((1, TB), jnp.float32)],       # d^2 accumulator over D tiles
        compiler_params=pltpu.CompilerParams(
            # Batch tiles independent ("parallel"); D is the accumulator axis ("arbitrary").
            # On v7x, pltpu.CORE_PARALLEL on the batch axis is a candidate for 2-TC sharding.
            dimension_semantics=("parallel", "arbitrary"),
            vmem_limit_bytes=int(vmem_limit),
        ),
    )(output1, output2, label_lanes)

    # Mean over the *real* batch; garbage rows from the ragged last tile are dropped.
    per_example = per_tile.reshape(B_lanes)[:B]
    return jnp.sum(per_example) * (1.0 / B)


def contrastive_loss_ref(output1, output2, label):
    """Pure-JAX reference for correctness checking (mirrors the PyTorch module)."""
    if label.ndim == 1:
        label = label[:, None]
    diff = output1.astype(jnp.float32) - output2.astype(jnp.float32) + EPS
    d = jnp.sqrt(jnp.sum(diff * diff, axis=-1, keepdims=True))
    hinge = jnp.maximum(MARGIN - d, 0.0)
    return jnp.mean((1.0 - label) * d * d + label * hinge * hinge)


if __name__ == "__main__":
    key = jax.random.PRNGKey(0)
    k1, k2, k3 = jax.random.split(key, 3)

    # Small shapes consistent with a siamese-embedding output.
    B, D = 8, 32
    o1 = jax.random.normal(k1, (B, D), dtype=jnp.float32)
    o2 = jax.random.normal(k2, (B, D), dtype=jnp.float32)
    lbl = jax.random.bernoulli(k3, 0.5, (B,)).astype(jnp.float32)
    loss = jax.block_until_ready(contrastive_loss(o1, o2, lbl))
    ref = contrastive_loss_ref(o1, o2, lbl)
    assert jnp.allclose(loss, ref, rtol=1e-5, atol=1e-5), (loss, ref)

    # Ragged batch (no input padding; garbage tail rows sliced off before the mean).
    B2 = 5
    o1b = jax.random.normal(k1, (B2, D), dtype=jnp.float32)
    o2b = jax.random.normal(k2, (B2, D), dtype=jnp.float32)
    lblb = jax.random.bernoulli(k3, 0.5, (B2,)).astype(jnp.float32)
    loss2 = jax.block_until_ready(contrastive_loss(o1b, o2b, lblb))
    ref2 = contrastive_loss_ref(o1b, o2b, lblb)
    assert jnp.allclose(loss2, ref2, rtol=1e-5, atol=1e-5), (loss2, ref2)

    # Multi-tile batch with a ragged tail + bf16 inputs (mem-bound op -> ~2x less HBM traffic).
    B3 = 100
    o1c = jax.random.normal(k1, (B3, D), dtype=jnp.bfloat16)
    o2c = jax.random.normal(k2, (B3, D), dtype=jnp.bfloat16)
    lblc = jax.random.bernoulli(k3, 0.5, (B3,)).astype(jnp.float32)
    loss3 = jax.block_until_ready(contrastive_loss(o1c, o2c, lblc))
    ref3 = contrastive_loss_ref(o1c, o2c, lblc)
    assert jnp.allclose(loss3, ref3, rtol=1e-4, atol=1e-4), (loss3, ref3)

    # Feature-tiled (accumulator) path with a ragged D tail (in-kernel lane mask).
    B4, D4 = 24, 200
    o1d = jax.random.normal(k1, (B4, D4), dtype=jnp.float32)
    o2d = jax.random.normal(k2, (B4, D4), dtype=jnp.float32)
    lbld = jax.random.bernoulli(k3, 0.5, (B4,)).astype(jnp.float32)
    loss4 = jax.block_until_ready(contrastive_loss(o1d, o2d, lbld, feature_block=128))
    ref4 = contrastive_loss_ref(o1d, o2d, lbld)
    assert jnp.allclose(loss4, ref4, rtol=1e-5, atol=1e-5), (loss4, ref4)

    print("KERNEL_OK")
</pallas_src>

<mosaic_0001>
module attributes {stable_mosaic.version = 11 : i64} {
  func.func @_contrastive_kernel(%arg0: i32, %arg1: i32, %arg2: memref<8x32xf32, #tpu.memory_space<vmem>>, %arg3: memref<8x32xf32, #tpu.memory_space<vmem>>, %arg4: memref<1x1x8xf32, #tpu.memory_space<vmem>>, %arg5: memref<1x1x8xf32, #tpu.memory_space<vmem>>, %arg6: memref<1x8xf32, #tpu.memory_space<vmem>>) attributes {dimension_semantics = [#tpu.dimension_semantics<parallel>, #tpu.dimension_semantics<arbitrary>], iteration_bounds = array<i64: 1, 1>, scalar_prefetch = 0 : i64, scratch_operands = 1 : i64, tpu.core_type = #tpu.core_type<tc>, window_params = [{transform_indices = @transform_0, window_bounds = array<i64: 8, 32>}, {transform_indices = @transform_1, window_bounds = array<i64: 8, 32>}, {transform_indices = @transform_2, window_bounds = array<i64: 1, 1, 8>}, {transform_indices = @transform_3, window_bounds = array<i64: 1, 1, 8>}]} {
    %c0_i32 = arith.constant 0 : i32
    %0 = arith.cmpi eq, %arg1, %c0_i32 : i32
    %1 = arith.extui %0 : i1 to i32
    %c0_i32_0 = arith.constant 0 : i32
    %2 = arith.cmpi ne, %1, %c0_i32_0 : i32
    scf.if %2 {
      %cst_11 = arith.constant 0.000000e+00 : f32
      %17 = vector.broadcast %cst_11 : f32 to vector<1x8xf32>
      %c0_12 = arith.constant 0 : index
      %c0_13 = arith.constant 0 : index
      %18 = vector.load %arg6[%c0_12, %c0_13] : memref<1x8xf32, #tpu.memory_space<vmem>>, vector<1x8xf32>
      tpu.vector_store %arg6[%c0_12, %c0_13], %17 {strides = array<i32>} : memref<1x8xf32, #tpu.memory_space<vmem>>, vector<1x8xf32>,
    } else {
    }
    %c0 = arith.constant 0 : index
    %c0_1 = arith.constant 0 : index
    %3 = vector.load %arg2[%c0, %c0_1] : memref<8x32xf32, #tpu.memory_space<vmem>>, vector<8x32xf32>
    %c0_2 = arith.constant 0 : index
    %c0_3 = arith.constant 0 : index
    %4 = vector.load %arg3[%c0_2, %c0_3] : memref<8x32xf32, #tpu.memory_space<vmem>>, vector<8x32xf32>
    %5 = arith.subf %3, %4 : vector<8x32xf32>
    %cst = arith.constant 9.99999997E-7 : f32
    %6 = vector.broadcast %cst : f32 to vector<8x32xf32>
    %7 = arith.addf %5, %6 : vector<8x32xf32>
    %8 = arith.mulf %7, %7 : vector<8x32xf32>
    %c0_4 = arith.constant 0 : index
    %c0_5 = arith.constant 0 : index
    %9 = vector.load %arg6[%c0_4, %c0_5] : memref<1x8xf32, #tpu.memory_space<vmem>>, vector<1x8xf32>
    %cst_6 = arith.constant dense<0.000000e+00> : vector<8xf32>
    %10 = vector.multi_reduction <add>, %8, %cst_6 [1] : vector<8x32xf32> to vector<8xf32>
    %11 = vector.shape_cast %10 : vector<8xf32> to vector<1x8xf32>
    %12 = arith.addf %9, %11 : vector<1x8xf32>
    %c0_7 = arith.constant 0 : index
    %c0_8 = arith.constant 0 : index
    %13 = vector.load %arg6[%c0_7, %c0_8] : memref<1x8xf32, #tpu.memory_space<vmem>>, vector<1x8xf32>
    tpu.vector_store %arg6[%c0_7, %c0_8], %12 {strides = array<i32>} : memref<1x8xf32, #tpu.memory_space<vmem>>, vector<1x8xf32>,
    %c0_i32_9 = arith.constant 0 : i32
    %14 = arith.cmpi eq, %arg1, %c0_i32_9 : i32
    %15 = arith.extui %14 : i1 to i32
    %c0_i32_10 = arith.constant 0 : i32
    %16 = arith.cmpi ne, %15, %c0_i32_10 : i32
    scf.if %16 {
      %c0_11 = arith.constant 0 : index
      %c0_12 = arith.constant 0 : index
      %17 = vector.load %arg6[%c0_11, %c0_12] : memref<1x8xf32, #tpu.memory_space<vmem>>, vector<1x8xf32>
      %18 = math.sqrt %17 : vector<1x8xf32>
      %cst_13 = arith.constant 2.000000e+00 : f32
      %19 = vector.broadcast %cst_13 : f32 to vector<1x8xf32>
      %20 = arith.subf %19, %18 : vector<1x8xf32>
      %cst_14 = arith.constant 0.000000e+00 : f32
      %21 = vector.broadcast %cst_14 : f32 to vector<1x8xf32>
      %22 = arith.maximumf %20, %21 : vector<1x8xf32>
      %c0_15 = arith.constant 0 : index
      %c0_16 = arith.constant 0 : index
      %c0_17 = arith.constant 0 : index
      %23 = vector.load %arg4[%c0_15, %c0_16, %c0_17] : memref<1x1x8xf32, #tpu.memory_space<vmem>>, vector<1x1x8xf32>
      %24 = vector.shape_cast %23 : vector<1x1x8xf32> to vector<1x8xf32>
      %cst_18 = arith.constant 1.000000e+00 : f32
      %25 = vector.broadcast %cst_18 : f32 to vector<1x8xf32>
      %26 = arith.subf %25, %24 : vector<1x8xf32>
      %27 = arith.mulf %26, %17 : vector<1x8xf32>
      %28 = arith.mulf %22, %22 : vector<1x8xf32>
      %29 = arith.mulf %24, %28 : vector<1x8xf32>
      %30 = arith.addf %27, %29 : vector<1x8xf32>
      %31 = vector.shape_cast %30 : vector<1x8xf32> to vector<1x1x8xf32>
      %c0_19 = arith.constant 0 : index
      %c0_20 = arith.constant 0 : index
      %c0_21 = arith.constant 0 : index
      %32 = vector.load %arg5[%c0_19, %c0_20, %c0_21] : memref<1x1x8xf32, #tpu.memory_space<vmem>>, vector<1x1x8xf32>
      tpu.vector_store %arg5[%c0_19, %c0_20, %c0_21], %31 {strides = array<i32>} : memref<1x1x8xf32, #tpu.memory_space<vmem>>, vector<1x1x8xf32>,
    } else {
    }
    return
  }
  func.func @transform_0(%arg0: i32, %arg1: i32) -> (i32, i32) {
    %c0_i32 = arith.constant 0 : i32
    return %arg0, %arg1 : i32, i32
  }
  func.func @transform_1(%arg0: i32, %arg1: i32) -> (i32, i32) {
    %c0_i32 = arith.constant 0 : i32
    return %arg0, %arg1 : i32, i32
  }
  func.func @transform_2(%arg0: i32, %arg1: i32) -> (i32, i32, i32) {
    %c0_i32 = arith.constant 0 : i32
    %c0_i32_0 = arith.constant 0 : i32
    %c0_i32_1 = arith.constant 0 : i32
    return %arg0, %c0_i32, %c0_i32_0 : i32, i32, i32
  }
  func.func @transform_3(%arg0: i32, %arg1: i32) -> (i32, i32, i32) {
    %c0_i32 = arith.constant 0 : i32
    %c0_i32_0 = arith.constant 0 : i32
    %c0_i32_1 = arith.constant 0 : i32
    return %arg0, %c0_i32, %c0_i32_0 : i32, i32, i32
  }
}

</mosaic_0001>

<bundles_post_ra>
// kernel: tpu_custom_call.1
= control target key start
LH: loop header
LB: loop body
LE: loop exit
PB: predicated region body
PF: predicated region fallthrough
CT: control target
= control target key end

     0   :  { %8 = vsyncpa [#allocation4], 0  ;;  %s316_s0 = inlined_call_operand.hbm [shape: f32[8,32], index: 0, kind: input, shape index: {}]   ;;  %s317_s1 = inlined_call_operand.hbm [shape: f32[8,32], index: 1, kind: input, shape index: {}]   ;;  %s318_s2 = inlined_call_operand.vmem [shape: f32[1,1,8], index: 2, kind: input, shape index: {}]   ;;  %s319_s3 = inlined_call_operand.hbm [shape: f32[1,1,8], index: 3, kind: output, shape index: {}]  }
   0x1   :  { %9 = vsyncpa [#allocation7], 0 }
   0x2   :  { %10 = vsyncpa [#allocation5], 0  ;;  %s275_s12 = smov [#allocation3]   ;;  %s276_s14 = smov [#allocation6]  }
   0x3   :  { %s17_s13 = sshll.u32 %s275_s12, 4  ;;  %s27_s15 = sshll.u32 %s276_s14, 4  ;;  %s18_s13 = int_to_ptr.vmem [resolvable:$true] %s17_s13  ;;  %s28_s15 = int_to_ptr.vmem [resolvable:$true] %s27_s15 }
   0x4   :  { %s217_s16 = scalar_lea.vmem %s18_s13, 128  ;;  %p222_p1 = scmp.lt.s32.totalorder %s18_s13, %s18_s13 }
   0x5   :  { %p218_p0 = scmp.ne.s32.totalorder %s18_s13, %s217_s16  ;;  %p223_p2 = scmp.lt.s32.totalorder %s217_s16, %s217_s16 }
   0x7   :  { %p224_p3 = por %p223_p2, %p222_p1 }
   0x9   :  { %p225_p4 = pnand %p224_p3, %p218_p0 }
   0xb   :  { %228 = shalt.err (!%p225_p4)
}
   0xc   :  { %20 = dma.hbm_to_vmem [thread:$0]  %s316_s0, 128, %s18_s13, [#allocation4]  }
   0xd   :  { %s237_s19 = scalar_lea.vmem %s28_s15, 128  ;;  %p242_p6 = scmp.lt.s32.totalorder %s28_s15, %s28_s15 }
   0xe   :  { %p238_p5 = scmp.ne.s32.totalorder %s28_s15, %s237_s19  ;;  %p243_p7 = scmp.lt.s32.totalorder %s237_s19, %s237_s19 }
  0x10   :  { %p244_p8 = por %p243_p7, %p242_p6 }
  0x12   :  { %p245_p9 = pnand %p244_p8, %p238_p5 }
  0x14   :  { %248 = shalt.err (!%p245_p9)
}
  0x15   :  { %30 = dma.hbm_to_vmem [thread:$0]  %s317_s1, 128, %s28_s15, [#allocation7]  }
  0x16   :  { %269 = dma.done.wait [#allocation4], 128  }
  0x17   :  { %270 = vsyncadd [#allocation4], 4294967168 }
  0x18   :  { %271 = dma.done.wait [#allocation7], 128  }
  0x19   :  { %272 = vsyncadd [#allocation7], 4294967168  ;;  %v45_v0 = vld [vmem:[#allocation3] sm:$0xff]  ;;  %v46_v1 = vld [vmem:[#allocation6] sm:$0xff]  ;;  %vm51_vm0 = vcmask 261120   ;;  %v277_v6 = vmov 0   ;;  %v56_v7 = vlaneseq }
  0x1a   :  { %v47_v2 = vsub.f32 %v45_v0, %v46_v1  ;;  %206 = vset.pattern.permute.xlu0 %v277_v6  ;;  %v278_v11 = vmov 1966171168   ;;  %vm43_vm1 = vcmask 57344   ;;  %v279_v42 = vmov 0.0   ;;  %v177_v58 = vld [vmem:[%s318_s2] sm:$0x1] }
  0x1b   :  { %v57_v8 = vshrl.u32 %v56_v7, 7  ;;  %v141_v9 = vand.u32 127, %v56_v7  ;;  %v93_v12 = vunpack.c.l.s4 %v278_v11  ;;  %44 = vst.msk [vmem:[#allocation2] sm:$0x1] %vm43_vm1, %v279_v42  ;;  %v178_v61 = vsub.f32 1.0, %v177_v58  ;;  %s280_s22 = smov [#allocation8]  }
  0x1c   :  { %v48_v3 = vadd.f32 1e-06, %v47_v2  ;;  %s190_s23 = sshll.u32 %s280_s22, 4  ;;  %s191_s23 = int_to_ptr.vmem [resolvable:$true] %s190_s23 }
  0x1d   :  { %v144_v10 = vsub.s32 %v141_v9, %v57_v8  ;;  %v94_v13 = vunpack.c.0.s8 %v93_v12  ;;  %v58_v14 = vsub.s32 0, %v57_v8  ;;  %v62_v15 = vsub.s32 1, %v57_v8  ;;  %s249_s24 = scalar_lea.vmem %s191_s23, 16  ;;  %s253_s25 = scalar_lea.vmem %s191_s23, 32 }
  0x1e   :  { %v49_v4 = vmul.f32 %v48_v3, %v48_v3  ;;  %v66_v16 = vsub.s32 2, %v57_v8  ;;  %v70_v17 = vsub.s32 3, %v57_v8  ;;  %v74_v18 = vsub.s32 4, %v57_v8  ;;  %p250_p10 = scmp.ne.s32.totalorder %s191_s23, %s249_s24  ;;  %p254_p11 = scmp.lt.s32.totalorder %s191_s23, %s191_s23 }
  0x1f   :  { %v78_v19 = vsub.s32 5, %v57_v8  ;;  %v82_v20 = vsub.s32 6, %v57_v8  ;;  %v86_v21 = vsub.s32 7, %v57_v8  ;;  %v97_v23 = vsub.s32 %v94_v13, %v57_v8  ;;  %p255_p12 = scmp.lt.s32.totalorder %s253_s25, %s249_s24 }
  0x20   :  { %v52_v5 = vsel %vm51_vm0, %v49_v4, 0.0 }
  0x21   :  { %53 = vadd.xlane.f32.xlu0 %v52_v5  ;;  %p256_p13 = por %p255_p12, %p254_p11 }
  0x22   :  { %v50_v49 = vld [vmem:[#allocation2] sm:$0x1] }
  0x23   :  { %p257_p0 = pnand %p256_p13, %p250_p10 }
  0xaa   :  { %v54_v22 = vpop.xlane.xlu0 %53 }
  0xab   :  { %v59_v24 = vrot.slane %v54_v22, %v58_v14  ;;  %v63_v25 = vrot.slane %v54_v22, %v62_v15  ;;  %v67_v26 = vrot.slane %v54_v22, %v66_v16  ;;  %v71_v27 = vrot.slane %v54_v22, %v70_v17 }
  0xac   :  { %v75_v28 = vrot.slane %v54_v22, %v74_v18  ;;  %v79_v29 = vrot.slane %v54_v22, %v78_v19  ;;  %v83_v30 = vrot.slane %v54_v22, %v82_v20  ;;  %v87_v31 = vrot.slane %v54_v22, %v86_v21 }
  0xad   :  { %v88_v32 = vcombine.low %v59_v24, %v63_v25  ;;  %v89_v33 = vcombine.low %v67_v26, %v71_v27 }
  0xae   :  { %v90_v34 = vcombine.low %v75_v28, %v79_v29  ;;  %v91_v35 = vcombine.low %v83_v30, %v87_v31 }
  0xaf   :  { %v98_v36 = vrot.slane %v88_v32, %v97_v23  ;;  %v105_v37 = vrot.slane %v89_v33, %v97_v23 }
  0xb0   :  { %v112_v38 = vrot.slane %v90_v34, %v97_v23  ;;  %v119_v39 = vrot.slane %v91_v35, %v97_v23 }
  0xb1   :  { %v120_v40 = vcombine.low %v98_v36, %v105_v37 }
  0xb2   :  { %v121_v41 = vcombine.low %v112_v38, %v119_v39 }
  0xb3   :  { %v128_v43 = vrot.slane %v120_v40, %v97_v23 }
  0xb4   :  { %v135_v44 = vrot.slane %v121_v41, %v97_v23 }
  0xb6   :  { %v136_v45 = vcombine.low %v128_v43, %v135_v44 }
  0xb8   :  { %138 = vperm.xlu0 %206, %v136_v45  }
 0x133   :  { %v139_v46 = vpop.permute.xlu0 %138 }
 0x134   :  { %v145_v47 = vrot.slane %v139_v46, %v144_v10 }
 0x136   :  { %v152_v48 = vrot.slane %v145_v47, %v97_v23 }
 0x138   :  { %v159_v50 = vrot.slane %v152_v48, %v97_v23 }
 0x13a   :  { %v161_v51 = vadd.f32 %v159_v50, %v50_v49 }
 0x13c   :  { %163 = vst.msk [vmem:[#allocation2] sm:$0x1] %vm43_vm1, %v161_v51 }
 0x143   :  { %v167_v52 = vld [vmem:[#allocation2] sm:$0x1] }
 0x144   :  { %207 = vrsqrt.f32 %v167_v52  ;;  %vm170_vm2 = vcmp.eq.f32.partialorder %v167_v52, inf  ;;  %v173_v55 = vand.u32 2147483648, %v167_v52  ;;  %vm172_vm3 = vcmp.eq.f32.partialorder %v167_v52, 0.0 }
 0x145   :  { %v179_v63 = vmul.f32 %v178_v61, %v167_v52 }
 0x151   :  { %v208_v53 = vpop.eup %207 }
 0x152   :  { %v169_v54 = vmul.f32 %v208_v53, %v167_v52 }
 0x154   :  { %v171_v56 = vsel %vm170_vm2, %v167_v52, %v169_v54 }
 0x155   :  { %v174_v57 = vsel %vm172_vm3, %v173_v55, %v171_v56 }
 0x156   :  { %v175_v59 = vsub.f32 2.0, %v174_v57 }
 0x158   :  { %v176_v60 = vmax.f32 %v175_v59, 0.0 }
 0x15a   :  { %v180_v62 = vmul.f32 %v176_v60, %v176_v60 }
 0x15c   :  { %v181_v0 = vmul.f32 %v180_v62, %v177_v58 }
 0x15e   :  { %v182_v1 = vadd.f32 %v181_v0, %v179_v63 }
 0x160   :  { %183 = vst.msk [vmem:[#allocation8] sm:$0x1] %vm43_vm1, %v182_v1 }
 0x161   :  { %260 = shalt.err (!%p257_p0)
}
 0x162   :  { %193 = dma.vmem_to_hbm [thread:$0]  %s191_s23, 16, %s319_s3, [#allocation5]  }
 0x163   :  { %273 = dma.done.wait [#allocation5], 16  }
 0x164   :  { %274 = vsyncadd [#allocation5], 4294967280 }
 0x165   :  { %197 = vsyncpa [#allocation4], 1 }
 0x166   :  { %198 = vsyncpa [#allocation7], 1 }
 0x167   :  { %199 = vsyncpa [#allocation5], 1 }

</bundles_post_ra>
